<compile_context>
chip_gen: v6e
topology: v6e:2x2x1
jax: 0.10.0
libtpu: 0.0.40
codegen_flags: <defaults>
</compile_context>

<pallas_src>
import functools
import math

import jax
import jax.numpy as jnp
from jax.experimental import pallas as pl
from jax.experimental.pallas import tpu as pltpu


def _round_up(v, m):
    return (v + m - 1) // m * m


def _pad2(a, rows, cols):
    return jnp.pad(a, ((0, rows - a.shape[0]), (0, cols - a.shape[1])))


# --------------------------------------------------------------------------------------
# Stage 1: fused encoder  enc = (ReLU(x @ W1 + b1)) @ W2 + b2
#   grid = (batch tiles [parallel], expr-dim reduction tiles [arbitrary])
# --------------------------------------------------------------------------------------
def _encoder_kernel(x_ref, w1_ref, b1_ref, w2_ref, b2_ref, enc_ref, h_acc, *, mm_dtype):
    e = pl.program_id(1)

    @pl.when(e == 0)
    def _init():
        h_acc[...] = jnp.zeros_like(h_acc)

    # bf16 x bf16 -> f32 accumulate on the MXU.
    h_acc[...] += jnp.dot(x_ref[...], w1_ref[...], preferred_element_type=jnp.float32)

    @pl.when(e == pl.num_programs(1) - 1)
    def _finish():
        # Bias add + ReLU hoisted out of the reduction loop; all elementwise in f32.
        h = jnp.maximum(h_acc[...] + b1_ref[...], 0.0)
        # TODO(synk): nn.Dropout(p=drop_out) in fc_expr is modeled as inference-mode identity.
        enc = jnp.dot(h.astype(mm_dtype), w2_ref[...],
                      preferred_element_type=jnp.float32) + b2_ref[...]
        enc_ref[...] = enc.astype(enc_ref.dtype)


# --------------------------------------------------------------------------------------
# Stage 2: logits tiles + online softmax statistics
#   grid = (batch tiles [parallel], num_texts tiles [arbitrary])
#   Contracts on the shared term_enc axis directly (texts kept as (N, T): no transpose).
# --------------------------------------------------------------------------------------
def _logits_stats_kernel(enc_ref, texts_ref, logits_ref, m_ref, l_ref, m_sc, l_sc,
                         *, tile_n, n_valid):
    j = pl.program_id(1)

    @pl.when(j == 0)
    def _init():
        m_sc[...] = jnp.full_like(m_sc, -jnp.inf)
        l_sc[...] = jnp.zeros_like(l_sc)

    # (TILE_B, T) x (TILE_N, T) -> (TILE_B, TILE_N), contracting the shared T axis.
    s = jax.lax.dot_general(
        enc_ref[...], texts_ref[...],
        dimension_numbers=(((1,), (1,)), ((), ())),
        preferred_element_type=jnp.float32)

    # Mask padded GO-term columns so they cannot dilute the softmax denominator.
    col = j * tile_n + jax.lax.broadcasted_iota(jnp.int32, s.shape, 1)
    s = jnp.where(col < n_valid, s, -1e30)

    m_prev = m_sc[...]
    m_new = jnp.maximum(m_prev, jnp.max(s, axis=1, keepdims=True))
    l_sc[...] = (l_sc[...] * jnp.exp(m_prev - m_new)
                 + jnp.sum(jnp.exp(s - m_new), axis=1, keepdims=True))
    m_sc[...] = m_new
    logits_ref[...] = s

    @pl.when(j == pl.num_programs(1) - 1)
    def _finish():
        m_ref[...] = m_sc[...]
        l_ref[...] = l_sc[...]


# --------------------------------------------------------------------------------------
# Stage 3: normalize   probs = exp(logits - m) * (1 / l)
#   grid = (batch tiles [parallel], num_texts tiles [parallel]); lane-dense stores.
# --------------------------------------------------------------------------------------
def _softmax_finalize_kernel(logits_ref, m_ref, l_ref, o_ref):
    inv_l = pl.reciprocal(l_ref[...], approx=False)
    o_ref[...] = jnp.exp(logits_ref[...] - m_ref[...]) * inv_l


# --------------------------------------------------------------------------------------
# Wrapper
# --------------------------------------------------------------------------------------
def biotranslator_forward(x_expr, texts, w1, b1, w2, b2, *,
                          tile_b=256, tile_e=512, tile_n=512,
                          matmul_dtype=jnp.bfloat16):
    """x_expr: (B, E) f32; texts: (N, T) f32; returns (B, N) f32 softmax probabilities."""
    f32 = jnp.float32
    B, E = x_expr.shape
    N, T = texts.shape
    H = w1.shape[1]

    # Tile sizes clamped to (padded) problem sizes; all padded dims are multiples of the
    # tile so the grids divide evenly.
    tile_b = min(tile_b, _round_up(B, 16))
    tile_e = min(tile_e, _round_up(E, 128))
    tile_n = min(tile_n, _round_up(N, 128))
    B_pad = _round_up(B, tile_b)
    E_pad = _round_up(E, tile_e)
    N_pad = _round_up(N, tile_n)
    H_pad = _round_up(H, 128)
    T_pad = _round_up(T, 128)
    nb, ne, nn = B_pad // tile_b, E_pad // tile_e, N_pad // tile_n
    mm = jnp.dtype(matmul_dtype).itemsize
    headroom = 8 << 20  # compiler/internal scratch headroom

    # Zero-pad to lane/sublane friendly shapes; matmul operands in bf16, biases in f32.
    x_p = _pad2(x_expr.astype(f32), B_pad, E_pad).astype(matmul_dtype)
    w1_p = _pad2(w1.astype(f32), E_pad, H_pad).astype(matmul_dtype)
    b1_p = _pad2(b1.reshape(1, -1).astype(f32), 1, H_pad)
    w2_p = _pad2(w2.astype(f32), H_pad, T_pad).astype(matmul_dtype)
    b2_p = _pad2(b2.reshape(1, -1).astype(f32), 1, T_pad)
    texts_p = _pad2(texts.astype(f32), N_pad, T_pad).astype(matmul_dtype)  # stays (N, T)

    # ---- Stage 1: encoder ------------------------------------------------------------
    k1_blocks = (tile_b * tile_e * mm + tile_e * H_pad * mm + H_pad * 4
                 + H_pad * T_pad * mm + T_pad * 4 + tile_b * T_pad * mm)
    k1_vmem = int(2 * k1_blocks + tile_b * H_pad * 4 + headroom)

    enc = pl.pallas_call(
        functools.partial(_encoder_kernel, mm_dtype=matmul_dtype),
        out_shape=jax.ShapeDtypeStruct((B_pad, T_pad), matmul_dtype),
        grid_spec=pltpu.PrefetchScalarGridSpec(
            num_scalar_prefetch=0,
            grid=(nb, ne),
            in_specs=[
                pl.BlockSpec((tile_b, tile_e), lambda i, e: (i, e)),   # x tile
                pl.BlockSpec((tile_e, H_pad), lambda i, e: (e, 0)),    # W1 K-slab (streams)
                pl.BlockSpec((1, H_pad), lambda i, e: (0, 0)),         # b1 (resident)
                pl.BlockSpec((H_pad, T_pad), lambda i, e: (0, 0)),     # W2 (resident)
                pl.BlockSpec((1, T_pad), lambda i, e: (0, 0)),         # b2 (resident)
            ],
            out_specs=pl.BlockSpec((tile_b, T_pad), lambda i, e: (i, 0)),
            scratch_shapes=[pltpu.VMEM((tile_b, H_pad), jnp.float32)],
        ),
        compiler_params=pltpu.CompilerParams(
            dimension_semantics=("parallel", "arbitrary"),
            vmem_limit_bytes=k1_vmem,
        ),
        cost_estimate=pl.CostEstimate(
            flops=int(2 * B_pad * (E_pad * H_pad + H_pad * T_pad)),
            transcendentals=0,
            bytes_accessed=int(x_p.nbytes
                               + nb * (w1_p.nbytes + w2_p.nbytes + b1_p.nbytes + b2_p.nbytes)
                               + B_pad * T_pad * mm),
        ),
    )(x_p, w1_p, b1_p, w2_p, b2_p)

    # ---- Stage 2: logits + online softmax stats ---------------------------------------
    k2_blocks = (tile_b * T_pad * mm + tile_n * T_pad * mm
                 + tile_b * tile_n * 4 + 2 * tile_b * 4)
    k2_vmem = int(2 * k2_blocks + 2 * tile_b * 4 + headroom)

    logits, m_row, l_row = pl.pallas_call(
        functools.partial(_logits_stats_kernel, tile_n=tile_n, n_valid=N),
        out_shape=(
            jax.ShapeDtypeStruct((B_pad, N_pad), jnp.float32),
            jax.ShapeDtypeStruct((B_pad, 1), jnp.float32),
            jax.ShapeDtypeStruct((B_pad, 1), jnp.float32),
        ),
        grid_spec=pltpu.PrefetchScalarGridSpec(
            num_scalar_prefetch=0,
            grid=(nb, nn),
            in_specs=[
                pl.BlockSpec((tile_b, T_pad), lambda i, j: (i, 0)),    # enc (resident per i)
                pl.BlockSpec((tile_n, T_pad), lambda i, j: (j, 0)),    # texts stream over N
            ],
            out_specs=[
                pl.BlockSpec((tile_b, tile_n), lambda i, j: (i, j)),   # raw (masked) logits
                pl.BlockSpec((tile_b, 1), lambda i, j: (i, 0)),        # row max
                pl.BlockSpec((tile_b, 1), lambda i, j: (i, 0)),        # row sum-exp
            ],
            scratch_shapes=[pltpu.VMEM((tile_b, 1), jnp.float32),
                            pltpu.VMEM((tile_b, 1), jnp.float32)],
        ),
        compiler_params=pltpu.CompilerParams(
            dimension_semantics=("parallel", "arbitrary"),
            vmem_limit_bytes=k2_vmem,
        ),
        cost_estimate=pl.CostEstimate(
            flops=int(2 * B_pad * T_pad * N_pad),
            transcendentals=int(B_pad * N_pad),
            bytes_accessed=int(nn * B_pad * T_pad * mm + nb * texts_p.nbytes
                               + B_pad * N_pad * 4 + 2 * B_pad * 4),
        ),
    )(enc, texts_p)

    # ---- Stage 3: normalize -------------------------------------------------------------
    k3_blocks = 2 * tile_b * tile_n * 4 + 2 * tile_b * 4
    k3_vmem = int(2 * k3_blocks + headroom)

    probs = pl.pallas_call(
        _softmax_finalize_kernel,
        out_shape=jax.ShapeDtypeStruct((B_pad, N_pad), jnp.float32),
        grid_spec=pltpu.PrefetchScalarGridSpec(
            num_scalar_prefetch=0,
            grid=(nb, nn),
            in_specs=[
                pl.BlockSpec((tile_b, tile_n), lambda i, j: (i, j)),
                pl.BlockSpec((tile_b, 1), lambda i, j: (i, 0)),
                pl.BlockSpec((tile_b, 1), lambda i, j: (i, 0)),
            ],
            out_specs=pl.BlockSpec((tile_b, tile_n), lambda i, j: (i, j)),
        ),
        compiler_params=pltpu.CompilerParams(
            dimension_semantics=("parallel", "parallel"),
            vmem_limit_bytes=k3_vmem,
        ),
        cost_estimate=pl.CostEstimate(
            flops=int(2 * B_pad * N_pad),
            transcendentals=int(B_pad * N_pad),
            bytes_accessed=int(2 * B_pad * N_pad * 4 + 2 * B_pad * 4),
        ),
    )(logits, m_row, l_row)

    return probs[:B, :N]


# --------------------------------------------------------------------------------------
# Reference / init helpers
# --------------------------------------------------------------------------------------
def _xavier_normal(key, fan_in, fan_out, gain=0.02):
    # torch.nn.init.xavier_normal_(weight, gain): std = gain * sqrt(2 / (fan_in + fan_out))
    std = gain * math.sqrt(2.0 / (fan_in + fan_out))
    return std * jax.random.normal(key, (fan_in, fan_out), dtype=jnp.float32)


def _reference(x, texts, w1, b1, w2, b2, mm_dtype):
    # Pure-JAX reference mirroring the kernel's matmul-operand casts.
    cast = lambda a: a.astype(mm_dtype).astype(jnp.float32)
    h = jnp.maximum(cast(x) @ cast(w1) + b1, 0.0)
    enc = cast(cast(h) @ cast(w2) + b2)
    logits = enc @ cast(texts).T
    return jax.nn.softmax(logits, axis=1)


if __name__ == "__main__":
    # Small shapes consistent with cfg.features=['expression'] that still exercise
    # multi-tile grids, padding and GO-term masking:
    #   batch=20 (tile 16 -> 2 batch tiles), expr_dim=300 (3 reduction tiles),
    #   hidden_dim=96 (pads to 128), term_enc_dim=80 (pads to 128),
    #   num GO terms=200 (pads to 256 -> 2 N tiles, last one masked).
    B, EXPR_DIM, HIDDEN_DIM, TERM_DIM, N_TEXTS = 20, 300, 96, 80, 200

    key = jax.random.PRNGKey(0)
    k_x, k_t, k_w1, k_w2 = jax.random.split(key, 4)

    x_expr = jax.random.normal(k_x, (B, EXPR_DIM), dtype=jnp.float32)
    texts = jax.random.normal(k_t, (N_TEXTS, TERM_DIM), dtype=jnp.float32)

    # xavier-normal (gain=0.02) weights, zero biases, as in BioTranslator.init_weights.
    w1 = _xavier_normal(k_w1, EXPR_DIM, HIDDEN_DIM)   # fc_expr Linear
    b1 = jnp.zeros((1, HIDDEN_DIM), dtype=jnp.float32)
    w2 = _xavier_normal(k_w2, HIDDEN_DIM, TERM_DIM)   # cat2emb Linear
    b2 = jnp.zeros((1, TERM_DIM), dtype=jnp.float32)

    out = biotranslator_forward(x_expr, texts, w1, b1, w2, b2,
                                tile_b=16, tile_e=128, tile_n=128)
    out = jax.block_until_ready(out)

    ref = _reference(x_expr, texts, w1, b1, w2, b2, jnp.bfloat16)
    assert out.shape == (B, N_TEXTS)
    assert bool(jnp.allclose(jnp.sum(out, axis=1), 1.0, atol=1e-3)), "rows do not sum to 1"
    assert bool(jnp.allclose(out, ref, atol=1e-4, rtol=1e-2)), \
        float(jnp.max(jnp.abs(out - ref)))

    print("KERNEL_OK")
</pallas_src>

<mosaic_0001>
module attributes {stable_mosaic.version = 11 : i64} {
  func.func @_encoder_kernel(%arg0: i32, %arg1: i32, %arg2: memref<16x128xbf16, #tpu.memory_space<vmem>>, %arg3: memref<128x128xbf16, #tpu.memory_space<vmem>>, %arg4: memref<1x128xf32, #tpu.memory_space<vmem>>, %arg5: memref<128x128xbf16, #tpu.memory_space<vmem>>, %arg6: memref<1x128xf32, #tpu.memory_space<vmem>>, %arg7: memref<16x128xbf16, #tpu.memory_space<vmem>>, %arg8: memref<16x128xf32, #tpu.memory_space<vmem>>) attributes {dimension_semantics = [#tpu.dimension_semantics<parallel>, #tpu.dimension_semantics<arbitrary>], iteration_bounds = array<i64: 2, 3>, scalar_prefetch = 0 : i64, scratch_operands = 1 : i64, tpu.core_type = #tpu.core_type<tc>, window_params = [{transform_indices = @transform_0, window_bounds = array<i64: 16, 128>}, {transform_indices = @transform_1, window_bounds = array<i64: 128, 128>}, {pipeline_mode = #tpu.pipeline_mode<synchronous>, transform_indices = @transform_2, window_bounds = array<i64: 1, 128>}, {pipeline_mode = #tpu.pipeline_mode<synchronous>, transform_indices = @transform_3, window_bounds = array<i64: 128, 128>}, {pipeline_mode = #tpu.pipeline_mode<synchronous>, transform_indices = @transform_4, window_bounds = array<i64: 1, 128>}, {transform_indices = @transform_5, window_bounds = array<i64: 16, 128>}]} {
    %c0_i32 = arith.constant 0 : i32
    %0 = arith.cmpi eq, %arg1, %c0_i32 : i32
    %1 = arith.extui %0 : i1 to i32
    %c0_i32_0 = arith.constant 0 : i32
    %2 = arith.cmpi ne, %1, %c0_i32_0 : i32
    scf.if %2 {
      %cst_9 = arith.constant 0.000000e+00 : f32
      %12 = vector.broadcast %cst_9 : f32 to vector<16x128xf32>
      %c0_10 = arith.constant 0 : index
      %c0_11 = arith.constant 0 : index
      %13 = vector.load %arg8[%c0_10, %c0_11] : memref<16x128xf32, #tpu.memory_space<vmem>>, vector<16x128xf32>
      tpu.vector_store %arg8[%c0_10, %c0_11], %12 {strides = array<i32>} : memref<16x128xf32, #tpu.memory_space<vmem>>, vector<16x128xf32>,
    } else {
    }
    %c0 = arith.constant 0 : index
    %c0_1 = arith.constant 0 : index
    %3 = vector.load %arg8[%c0, %c0_1] : memref<16x128xf32, #tpu.memory_space<vmem>>, vector<16x128xf32>
    %c0_2 = arith.constant 0 : index
    %c0_3 = arith.constant 0 : index
    %4 = vector.load %arg2[%c0_2, %c0_3] : memref<16x128xbf16, #tpu.memory_space<vmem>>, vector<16x128xbf16>
    %c0_4 = arith.constant 0 : index
    %c0_5 = arith.constant 0 : index
    %5 = vector.load %arg3[%c0_4, %c0_5] : memref<128x128xbf16, #tpu.memory_space<vmem>>, vector<128x128xbf16>
    %cst = arith.constant dense<0.000000e+00> : vector<16x128xf32>
    %6 = tpu.matmul %4, %5, %cst {dimension_numbers = #tpu.dot_dimension_numbers<[1], [0], [0], [1], [0, 0, 1, 1], [], []>} : vector<16x128xbf16>, vector<128x128xbf16>, vector<16x128xf32> -> vector<16x128xf32>
    %7 = arith.addf %3, %6 : vector<16x128xf32>
    %c0_6 = arith.constant 0 : index
    %c0_7 = arith.constant 0 : index
    %8 = vector.load %arg8[%c0_6, %c0_7] : memref<16x128xf32, #tpu.memory_space<vmem>>, vector<16x128xf32>
    tpu.vector_store %arg8[%c0_6, %c0_7], %7 {strides = array<i32>} : memref<16x128xf32, #tpu.memory_space<vmem>>, vector<16x128xf32>,
    %c2_i32 = arith.constant 2 : i32
    %9 = arith.cmpi eq, %arg1, %c2_i32 : i32
    %10 = arith.extui %9 : i1 to i32
    %c0_i32_8 = arith.constant 0 : i32
    %11 = arith.cmpi ne, %10, %c0_i32_8 : i32
    scf.if %11 {
      %c0_9 = arith.constant 0 : index
      %c0_10 = arith.constant 0 : index
      %12 = vector.load %arg8[%c0_9, %c0_10] : memref<16x128xf32, #tpu.memory_space<vmem>>, vector<16x128xf32>
      %c0_11 = arith.constant 0 : index
      %c0_12 = arith.constant 0 : index
      %13 = vector.load %arg4[%c0_11, %c0_12] : memref<1x128xf32, #tpu.memory_space<vmem>>, vector<1x128xf32>
      %14 = vector.broadcast %13 : vector<1x128xf32> to vector<16x128xf32>
      %15 = arith.addf %12, %14 : vector<16x128xf32>
      %cst_13 = arith.constant 0.000000e+00 : f32
      %16 = vector.broadcast %cst_13 : f32 to vector<16x128xf32>
      %17 = arith.maximumf %15, %16 : vector<16x128xf32>
      %18 = arith.truncf %17 : vector<16x128xf32> to vector<16x128xbf16>
      %c0_14 = arith.constant 0 : index
      %c0_15 = arith.constant 0 : index
      %19 = vector.load %arg5[%c0_14, %c0_15] : memref<128x128xbf16, #tpu.memory_space<vmem>>, vector<128x128xbf16>
      %cst_16 = arith.constant dense<0.000000e+00> : vector<16x128xf32>
      %20 = tpu.matmul %18, %19, %cst_16 {dimension_numbers = #tpu.dot_dimension_numbers<[1], [0], [0], [1], [0, 0, 1, 1], [], []>} : vector<16x128xbf16>, vector<128x128xbf16>, vector<16x128xf32> -> vector<16x128xf32>
      %c0_17 = arith.constant 0 : index
      %c0_18 = arith.constant 0 : index
      %21 = vector.load %arg6[%c0_17, %c0_18] : memref<1x128xf32, #tpu.memory_space<vmem>>, vector<1x128xf32>
      %22 = vector.broadcast %21 : vector<1x128xf32> to vector<16x128xf32>
      %23 = arith.addf %20, %22 : vector<16x128xf32>
      %24 = arith.truncf %23 : vector<16x128xf32> to vector<16x128xbf16>
      %c0_19 = arith.constant 0 : index
      %c0_20 = arith.constant 0 : index
      %25 = vector.load %arg7[%c0_19, %c0_20] : memref<16x128xbf16, #tpu.memory_space<vmem>>, vector<16x128xbf16>
      tpu.vector_store %arg7[%c0_19, %c0_20], %24 {strides = array<i32>} : memref<16x128xbf16, #tpu.memory_space<vmem>>, vector<16x128xbf16>,
    } else {
    }
    return
  }
  func.func @transform_0(%arg0: i32, %arg1: i32) -> (i32, i32) {
    %c0_i32 = arith.constant 0 : i32
    return %arg0, %arg1 : i32, i32
  }
  func.func @transform_1(%arg0: i32, %arg1: i32) -> (i32, i32) {
    %c0_i32 = arith.constant 0 : i32
    %c0_i32_0 = arith.constant 0 : i32
    return %arg1, %c0_i32 : i32, i32
  }
  func.func @transform_2(%arg0: i32, %arg1: i32) -> (i32, i32) {
    %c0_i32 = arith.constant 0 : i32
    %c0_i32_0 = arith.constant 0 : i32
    %c0_i32_1 = arith.constant 0 : i32
    return %c0_i32, %c0_i32_0 : i32, i32
  }
  func.func @transform_3(%arg0: i32, %arg1: i32) -> (i32, i32) {
    %c0_i32 = arith.constant 0 : i32
    %c0_i32_0 = arith.constant 0 : i32
    %c0_i32_1 = arith.constant 0 : i32
    return %c0_i32, %c0_i32_0 : i32, i32
  }
  func.func @transform_4(%arg0: i32, %arg1: i32) -> (i32, i32) {
    %c0_i32 = arith.constant 0 : i32
    %c0_i32_0 = arith.constant 0 : i32
    %c0_i32_1 = arith.constant 0 : i32
    return %c0_i32, %c0_i32_0 : i32, i32
  }
  func.func @transform_5(%arg0: i32, %arg1: i32) -> (i32, i32) {
    %c0_i32 = arith.constant 0 : i32
    %c0_i32_0 = arith.constant 0 : i32
    return %arg0, %c0_i32 : i32, i32
  }
}

</mosaic_0001>

<bundles_post_ra>
// kernel: tpu_custom_call.1
= control target key start
LH: loop header
LB: loop body
LE: loop exit
PB: predicated region body
PF: predicated region fallthrough
CT: control target
= control target key end

     0   :  { %s1611_s0 = inlined_call_operand.hbm [shape: bf16[32,384], index: 0, kind: input, shape index: {}]   ;;  %s1612_s1 = inlined_call_operand.hbm [shape: bf16[384,128], index: 1, kind: input, shape index: {}]   ;;  %s1613_s2 = inlined_call_operand.vmem [shape: f32[1,128], index: 2, kind: input, shape index: {}]   ;;  %s1614_s3 = inlined_call_operand.hbm [shape: bf16[128,128], index: 3, kind: input, shape index: {}]   ;;  %s1615_s4 = inlined_call_operand.vmem [shape: f32[1,128], index: 4, kind: input, shape index: {}]   ;;  %s1616_s5 = inlined_call_operand.hbm [shape: bf16[32,128], index: 5, kind: output, shape index: {}]  }
   0x1   :  { %1636 = sst [smem:[#allocation23_spill]] %s1613_s2 }
   0x2   :  { %1637 = sst [smem:[#allocation24_spill]] %s1614_s3 }
   0x3   :  { %1638 = sst [smem:[#allocation25_spill]] %s1615_s4 }
   0x4   :  { %1639 = sst [smem:[#allocation26_spill]] %s1616_s5 }
   0x5   :  { %10 = vsyncpa [#allocation4], 0 }
   0x6   :  { %12 = vsyncpa [#allocation4 + $0x1], 0 }
   0x7   :  { %13 = vsyncpa [#allocation7], 0 }
   0x8   :  { %15 = vsyncpa [#allocation7 + $0x1], 0 }
   0x9   :  { %16 = vsyncpa [#allocation5], 0 }
   0xa   :  { %18 = vsyncpa [#allocation5 + $0x1], 0  ;;  %s1276_s18 = smov 0   ;;  %s1278_s19 = smov 0  }
   0xb   :  { %s1280_s20 = smov 0   ;;  %s1282_s21 = smov 0  }
   0xc   :  { %s1284_s22 = smov 0   ;;  %s1286_s23 = smov 0  }
   0xd   :  { %s1288_s24 = smov 0   ;;  %s1290_s25 = smov 0  }
   0xe   :  { %s1292_s26 = smov 0   ;;  %s1294_s27 = smov 0  }
   0xf   :  { %s1296_s28 = smov 0   ;;  %s1298_s29 = smov 0  }
  0x10   :  { %s1300_s30 = smov 0   ;;  %s1302_s6 = smov 0  }
  0x11 LB: > { %1640 = sst [smem:[#allocation14_spill]] %s1178_s18  ;;  %s1343_s7 = sadd.s32 4294967295, %s1230_s6   ;;  %s1230_s6 = sphi %s1302_s6, %s24_s6   ;;  %s1226_s30 = sphi %s1300_s30, %s1694_s30   ;;  %s1222_s29 = sphi %s1298_s29, %s1693_s29   ;;  %s1218_s28 = sphi %s1296_s28, %s1692_s28   ;;  %s1214_s27 = sphi %s1294_s27, %s1691_s27   ;;  %s1210_s26 = sphi %s1292_s26, %s1690_s26   ;;  %s1206_s25 = sphi %s1290_s25, %s1689_s25   ;;  %s1202_s24 = sphi %s1288_s24, %s1688_s24   ;;  %s1198_s23 = sphi %s1286_s23, %s1687_s23   ;;  %s1194_s22 = sphi %s1284_s22, %s1686_s22   ;;  %s1190_s21 = sphi %s1282_s21, %s1685_s21   ;;  %s1186_s20 = sphi %s1280_s20, %s1684_s20   ;;  %s1182_s19 = sphi %s1278_s19, %s1683_s19   ;;  %s1178_s18 = sphi %s1276_s18, %s1681_s18  }
  0x12   : > { %1641 = sst [smem:[#allocation15_spill]] %s1182_s19  ;;  %s715_s8 = sadd.s32 4294967294, %s1230_s6  }
  0x13   : > { %1642 = sst [smem:[#allocation16_spill]] %s1214_s27  ;;  %p58_p0 = scmp.ne.s32.totalorder %s1206_s25, %s1202_s24 }
  0x14   : > { %1643 = sst [smem:[#allocation17_spill]] %s1218_s28  ;;  %p1635_p1 = scmp.eq.s32.totalorder %s1343_s7, 0 }
  0x15   : > { %1644 = sst [smem:[#allocation18_spill]] %s1343_s7  ;;  %p84_p2 = scmp.ne.s32.totalorder %s1194_s22, %s1190_s21 }
  0x16   : > { %p1352_p3 = por %p1635_p1, %p58_p0  ;;  %p170_p4 = scmp.ne.s32.totalorder %s1186_s20, %s1182_s19 }
  0x17   : > { %p1360_p5 = por %p84_p2, %p1635_p1  ;;  %p171_p6 = scmp.eq.s32.totalorder %s1343_s7, 5 }
  0x18   : > { %p176_p7 = scmp.ne.s32.totalorder %s1182_s19, %s1178_s18  ;;  %p177_p8 = scmp.eq.s32.totalorder %s715_s8, 5 }
  0x19   : > { %s1646_s11 = scalar_select %p1360_p5, 1, 0 }
  0x1a   : > { %p1367_p9 = por %p171_p6, %p170_p4  ;;  %p716_p10 = scmp.ge.s32.totalorder %s1230_s6, 1 }
  0x1b   : > { %1647 = sst [smem:[#allocation19_spill]] %s1646_s11  ;;  %p1372_p11 = por %p177_p8, %p176_p7 }
  0x1c   : > { %s1648_s12 = scalar_select %p1367_p9, 1, 0 }
  0x1d   : > { %s1650_s13 = scalar_select %p1372_p11, 1, 0 }
  0x1e   : > { %1649 = sst [smem:[#allocation20_spill]] %s1648_s12  ;;  %p184_p12 = scmp.lt.s32.totalorder %s1230_s6, 7 }
  0x1f   : > { %1651 = sst [smem:[#allocation21_spill]] %s1650_s13  ;;  %s1232_s15 = smov [#allocation8]  }
  0x20   : > { %p1377_p13 = pnand %p716_p10, %p184_p12  ;;  %s199_s16 = sshll.u32 %s1232_s15, 4  ;;  %s200_s16 = int_to_ptr.vmem [resolvable:$true] %s199_s16 }
  0x21   : > { %s1007_s17 = scalar_lea.vmem %s200_s16, 1024  ;;  %p1015_p9 = scmp.lt.s32.totalorder %s200_s16, %s200_s16 }
  0x22   : > { %p837_p0 = pneg %p1377_p13  ;;  %p1008_p6 = scmp.ne.s32.totalorder %s200_s16, %s1007_s17 }
  0x23   : > { %p1016_p11 = scmp.lt.s32.totalorder %s1007_s17, %s1007_s17 }
  0x24   : > { %p838_p2 = pnand %p837_p0, %p1635_p1 }
  0x25   : > { %p1017_p5 = por %p1016_p11, %p1015_p9 }
  0x26   : > { %p998_p4 = pneg %p838_p2 }
  0x28   : > { %p1010_p7 = pnand %p1008_p6, %p998_p4 }
  0x2a   : > { %p1011_p8 = pneg %p1010_p7 }
  0x2c   : > { %p1018_p10 = pnand %p1017_p5, %p1011_p8 }
  0x2e   : > { %1021 = shalt.err (!%p1018_p10)
}
  0x2f   : > { %s1621_s21 = smov 64   ;;  %s1623_s24 = smov 4  }
  0x30   : > { %s1653_s3 = sld [smem:[#allocation24_spill]]  ;;  %s33_s17 = sadd.s32 1, %s1222_s29 }
  0x31   : > { %p34_p5 = scmp.ge.s32.totalorder %s33_s17, 3  ;;  %s36_s9 = sadd.s32 1, %s1226_s30 }
  0x32   : > { %s45_s13 = sadd.s32 1, %s1210_s26  ;;  %p52_p9 = scmp.ne.s32.totalorder %s1210_s26, %s1206_s25 }
  0x33   : > { %s1696_s17 = smov (%p34_p5, %s33_s17), 0  ;;  %s1698_s9 = smov (!%p34_p5, %s36_s9), %s1226_s30 }
  0x34   : > { %1654 = sst [smem:[#allocation22_spill]] %s1696_s17  ;;  %s1401_s18 = ssub.s32 %s1222_s29, %s1696_s17 }
  0x35   : > { %p53_p11 = scmp.eq.s32.totalorder %s1230_s6, 0  ;;  %p38_p12 = scmp.ge.s32.totalorder %s1698_s9, 2 }
  0x36   : > { %840 = dma.hbm_to_vmem [thread:$0]  (!%p838_p2), %s1653_s3, 1024, %s200_s16, [#allocation7], %s1621_s21, %s1621_s21, %s1623_s24  }
  0x37   : > { %p69_p0 = scmp.eq.s32.totalorder %s1401_s18, 0  ;;  %p1407_p2 = por %p53_p11, %p52_p9 }
  0x38   : > { %p853_p4 = scmp.lt.s32.totalorder %s1230_s6, 6  ;;  %s1700_s9 = smov (%p38_p12, %s1698_s9), 0 }
  0x39   : > { %s216_s8 = sand.u32 1, %s1210_s26   ;;  %s826_s15 = smul.u32 6, %s1226_s30 }
  0x3a   : > { %s40_s21 = ssub.s32 %s1226_s30, %s1700_s9  ;;  %s719_s3 = sshll.u32 %s216_s8, 3 }
  0x3b   : > { %s42_s24 = sor.u32 %s1401_s18, %s40_s21  ;;  %p158_p6 = scmp.eq.s32.totalorder %s40_s21, 0 }
  0x3c   : > { %p43_p7 = scmp.eq.s32.totalorder %s42_s24, 0  ;;  %s1656_s17 = sadd.s32 1, %s1186_s20 }
  0x3d   : > { %s1422_s5 = scalar_select %p158_p6, %s1186_s20, %s1656_s17  }
  0x3e   : > { %s1425_s12 = scalar_select %p43_p7, %s1210_s26, %s45_s13  }
  0x3f   : > { %s226_s28 = sadd.s32 %s1222_s29, %s826_s15  ;;  %s220_s2 = scalar_lea.vmem [#allocation3], %s719_s3 }
  0x40   : > { %s722_s4 = sshll.u32 %s226_s28, 6  ;;  %s229_s27 = sshll.u32 %s220_s2, 4  ;;  %s230_s27 = int_to_ptr.vmem [resolvable:$true] %s229_s27 }
  0x41   : > { %s228_s7 = scalar_lea.hbm %s1611_s0, %s722_s4  ;;  %p1435_p8 = pnand %p853_p4, %p1407_p2 }
  0x42   : > { %s217_s17 = scalar_lea.sflag [#allocation4], %s216_s8  ;;  %s1035_s13 = scalar_lea.vmem %s230_s27, 128 }
  0x43   : > { %p1024_p10 = pneg %p1435_p8  ;;  %p1036_p5 = scmp.ne.s32.totalorder %s230_s27, %s1035_s13 }
  0x44   : > { %s1235_s2 = smov [#allocation3]  }
  0x45   : > { %p1038_p9 = pnand %p1036_p5, %p1024_p10  ;;  %s1040_s3 = sshll.u32 %s1235_s2, 4  ;;  %s1041_s3 = int_to_ptr.vmem [resolvable:$false] %s1040_s3 }
  0x46   : > { %s1042_s4 = scalar_lea.vmem %s1041_s3, 256  ;;  %p1043_p6 = scmp.lt.s32.totalorder %s230_s27, %s1041_s3 }
  0x47   : > { %p1039_p12 = pneg %p1038_p9  ;;  %p1044_p7 = scmp.lt.s32.totalorder %s1042_s4, %s1035_s13 }
  0x49   : > { %p1045_p1 = por %p1044_p7, %p1043_p6 }
  0x4b   : > { %p1046_p2 = pnand %p1045_p1, %p1039_p12 }
  0x4d   : > { %1049 = shalt.err (!%p1046_p2)
}
  0x4e   : > { %s1236_s19 = smov 192   ;;  %s1658_s28 = smov 4  }
  0x4f   : > { %s1659_s11 = smov 64   ;;  %s71_s16 = sadd.s32 1, %s1198_s23 }
  0x50   : > { %844 = dma.hbm_to_vmem [thread:$0]  (!%p1435_p8), %s228_s7, 128, %s230_s27, %s217_s17, %s1236_s19, %s1659_s11, %s1658_s28  }
  0x51   : > { %p78_p10 = scmp.ne.s32.totalorder %s1198_s23, %s1194_s22  ;;  %s241_s15 = sand.u32 1, %s1198_s23  }
  0x52   : > { %s1452_s8 = scalar_select %p69_p0, %s1198_s23, %s71_s16  }
  0x53   : > { %p80_p1 = por %p78_p10, %p53_p11  ;;  %s759_s21 = sshll.u32 %s1222_s29, 10 }
  0x54   : > { %s723_s13 = sshll.u32 %s241_s15, 6  ;;  %s249_s4 = scalar_lea.hbm %s1612_s1, %s759_s21 }
  0x55   : > { %p1463_p5 = pnand %p853_p4, %p80_p1  ;;  %s243_s27 = scalar_lea.vmem [#allocation6], %s723_s13 }
  0x56   : > { %s250_s7 = sshll.u32 %s243_s27, 4  ;;  %s1661_s18 = sand.u32 1, %s1230_s6   ;;  %s251_s7 = int_to_ptr.vmem [resolvable:$true] %s250_s7 }
  0x57   : > { %s240_s17 = scalar_lea.sflag [#allocation7], %s1661_s18  ;;  %p1052_p11 = pneg %p1463_p5 }
  0x58   : > { %s1063_s19 = scalar_lea.vmem %s251_s7, 1024  ;;  %s1237_s16 = smov [#allocation6]  }
  0x59   : > { %p1064_p0 = scmp.ne.s32.totalorder %s251_s7, %s1063_s19  ;;  %s1068_s15 = sshll.u32 %s1237_s16, 4  ;;  %s1069_s15 = int_to_ptr.vmem [resolvable:$false] %s1068_s15 }
  0x5a   : > { %s1070_s21 = scalar_lea.vmem %s1069_s15, 2048  ;;  %p1071_p4 = scmp.lt.s32.totalorder %s251_s7, %s1069_s15 }
  0x5b   : > { %p1066_p8 = pnand %p1064_p0, %p1052_p11  ;;  %p1072_p12 = scmp.lt.s32.totalorder %s1070_s21, %s1063_s19 }
  0x5d   : > { %p1067_p9 = pneg %p1066_p8  ;;  %p1073_p6 = por %p1072_p12, %p1071_p4 }
  0x5f   : > { %p1074_p7 = pnand %p1073_p6, %p1067_p9 }
  0x61   : > { %1077 = shalt.err (!%p1074_p7)
}
  0x62   : > { %847 = dma.hbm_to_vmem [thread:$0]  (!%p1463_p5), %s249_s4, 1024, %s251_s7, %s240_s17, %s1659_s11, %s1659_s11, %s1658_s28  }
  0x63   : > { %262 = sbr.rel (%p1377_p13) target bundleno = 630 (0x276), region = 40  ;;  %s264_s13 = sand.u32 (!%p1377_p13), 1, %s1206_s25  }
  0x64   : > { %s1479_s2 = sshll.u32 (!%p1377_p13), %s264_s13, 3  ;;  %s265_s3 = scalar_lea.sflag (!%p1377_p13), [#allocation4], %s264_s13 }
  0x65   : > { %s268_s27 = scalar_lea.vmem (!%p1377_p13), [#allocation3], %s1479_s2 }
  0x68   : > { %1161 = dma.done.wait (%p1352_p3), %s265_s3, 128  }
  0x69   : > { %1163 = vsyncadd (%p1352_p3), %s265_s3, 4294967168  ;;  %s1662_s24 = sld [smem:[#allocation18_spill]]  ;;  %s275_s11 = sand.u32 1, %s1194_s22  }
  0x6a   : > { %s1663_s18 = sld [smem:[#allocation19_spill]]  ;;  %s728_s14 = sshll.u32 %s275_s11, 6 }
  0x6b   : > { %s1488_s7 = scalar_lea.vmem [#allocation6], %s728_s14 }
  0x6f   : > { %s273_s28 = sand.u32 1, %s1662_s24  }
  0x70   : > { %s274_s4 = scalar_lea.sflag [#allocation7], %s273_s28  ;;  %p1664_p13 = scmp.ne.s32.totalorder %s1663_s18, 0 }
  0x72   : > { %1165 = dma.done.wait (%p1664_p13), %s274_s4, 1024  }
  0x73   : > { %1167 = vsyncadd (%p1664_p13), %s274_s4, 4294966272  ;;  %p1665_p2 = scmp.eq.s32.totalorder %s1662_s24, 0 }
  0x75   : > { %1169 = dma.done.wait (%p1665_p2), [#allocation7], 1024   ;;  %p1666_p10 = pmov %p1665_p2 }
  0x76   : > { %s1667_s10 = sld [smem:[#allocation15_spill]] }
  0x77   : > { %1171 = vsyncadd (%p1666_p10), [#allocation7], 4294966272  ;;  %s1668_s15 = sld [smem:[#allocation16_spill]] }
  0x7c   : > { %s310_s17 = sand.u32 1, %s1667_s10  }
  0x7d   : > { %s1501_s19 = sshll.u32 %s310_s17, 3  ;;  %p731_p3 = scmp.ne.s32.totalorder %s1668_s15, 0 }
  0x7e   : > { %s312_s16 = scalar_lea.vmem [#allocation9], %s1501_s19 }
  0x7f   : > { %320 = sbr.rel (%p731_p3) target bundleno = 134 (0x86), region = 56 }
  0x84   : > { %v1238_v0 = vmov 0.0  }
  0x85   : > { %321 = vst [vmem:[#allocation2] sm:$0xff] %v1238_v0  ;;  %322 = vst [vmem:[#allocation2 + $0x8] sm:$0xff] %v1238_v0 }
  0x86 PF: > { %v979_v1 = vld [vmem:[%s1488_s7 + $0x38] sm:$0xff]   ;;  %v1239_v2 = vmov 0.0   ;;  %v980_v3 = vld [vmem:[%s1488_s7 + $0x30] sm:$0xff]   ;;  %vm1240_vm0 = vmmov 0   ;;  %v981_v4 = vld [vmem:[%s1488_s7 + $0x28] sm:$0xff]   ;;  %s1669_s21 = sld [smem:[#allocation16_spill]] }
  0x87   : > { %786 = vmatprep.subr.bf16.mxu0 %v1239_v2  ;;  %802 = vmatprep.mubr.msk.bf16.mxu0 %vm1240_vm0, %v1239_v2  ;;  %v982_v5 = vld [vmem:[%s1488_s7 + $0x20] sm:$0xff]   ;;  %v983_v6 = vld [vmem:[%s1488_s7 + $0x18] sm:$0xff]   ;;  %v984_v7 = vld [vmem:[%s1488_s7 + $0x10] sm:$0xff]  }
  0x88   : > { %787 = vmatpush3.bf16.msra.mxu0 %v979_v1  ;;  %v985_v8 = vld [vmem:[%s1488_s7 + $0x8] sm:$0xff]   ;;  %v986_v9 = vld [vmem:[%s1488_s7] sm:$0xff]   ;;  %v987_v10 = vld [vmem:[%s268_s27] sm:$0xff]  }
  0x89   : > { %788 = vmatprep.subr.bf16.mxu0 %v1239_v2 }
  0x8c   : > { %789 = vmatpush3.bf16.msra.mxu0 %v980_v3  ;;  %v323_v11 = vld [vmem:[#allocation2] sm:$0xff]  ;;  %v324_v15 = vld [vmem:[#allocation2 + $0x8] sm:$0xff]  ;;  %p741_p1 = scmp.ne.s32.totalorder %s1669_s21, 2 }
  0x8d   : > { %790 = vmatprep.subr.bf16.mxu0 %v1239_v2  ;;  %s1670_s3 = sld [smem:[#allocation23_spill]] (!%p741_p1) }
  0x8e   : > { %s1671_s18 = sld [smem:[#allocation25_spill]] (!%p741_p1) }
  0x90   : > { %791 = vmatpush3.bf16.msra.mxu0 %v981_v4 }
  0x91   : > { %792 = vmatprep.subr.bf16.mxu0 %v1239_v2 }
  0x94   : > { %793 = vmatpush3.bf16.msra.mxu0 %v982_v5 }
  0x95   : > { %794 = vmatprep.subr.bf16.mxu0 %v1239_v2 }
  0x98   : > { %795 = vmatpush3.bf16.msra.mxu0 %v983_v6 }
  0x99   : > { %796 = vmatprep.subr.bf16.mxu0 %v1239_v2 }
  0x9c   : > { %797 = vmatpush3.bf16.msra.mxu0 %v984_v7 }
  0x9d   : > { %798 = vmatprep.subr.bf16.mxu0 %v1239_v2 }
  0xa0   : > { %799 = vmatpush3.bf16.msra.mxu0 %v985_v8 }
  0xa1   : > { %800 = vmatprep.subr.bf16.mxu0 %v1239_v2 }
  0xa4   : > { %801 = vmatpush3.bf16.msra.mxu0 %v986_v9 }
  0xa7   : > { %803 = vmatmul.mubr.bf16.vlgmr.msra.gmra.mxu0 %v987_v10 }
 0x167   : > { %v431_v12 = vpop.f32.mrf.mxu0 }
 0x168   : > { %v438_v13 = vadd.f32 %v431_v12, %v323_v11 }
 0x169   : > { %v804_v14 = vpop.f32.mrf.mxu0 }
 0x16a   : > { %440 = vst [vmem:[#allocation2] sm:$0xff] %v438_v13  ;;  %445 = sbr.rel (%p741_p1) target bundleno = 602 (0x25a), region = 60 }
 0x16b   : > { %v434_v16 = vpop.f32.mrf.mxu0 }
 0x16c   : > { %v439_v17 = vadd.f32 %v434_v16, %v324_v15 }
 0x16d   : > { %v805_v18 = vpop.f32.mrf.mxu0 }
 0x16e   : > { %441 = vst [vmem:[#allocation2 + $0x8] sm:$0xff] %v439_v17 }
 0x16f   : > { %v988_v19 = vld [vmem:[#allocation8 + $0x38] sm:$0xff]   ;;  %v1241_v20 = vmov 0.0   ;;  %v989_v21 = vld [vmem:[#allocation8 + $0x30] sm:$0xff]   ;;  %vm1242_vm1 = vmmov 0   ;;  %v990_v22 = vld [vmem:[#allocation8 + $0x28] sm:$0xff]  }
 0x170   : > { %806 = vmatprep.subr.bf16.mxu0 %v1241_v20  ;;  %822 = vmatprep.mubr.msk.bf16.mxu0 %vm1242_vm1, %v1241_v20  ;;  %v991_v23 = vld [vmem:[#allocation8 + $0x20] sm:$0xff]   ;;  %v992_v24 = vld [vmem:[#allocation8 + $0x18] sm:$0xff]   ;;  %v993_v25 = vld [vmem:[#allocation8 + $0x10] sm:$0xff]  }
 0x171   : > { %807 = vmatpush3.bf16.msra.mxu0 %v988_v19  ;;  %v446_v26 = vld [vmem:[#allocation2] sm:$0xff]  ;;  %v994_v31 = vld [vmem:[#allocation8 + $0x8] sm:$0xff]  }
 0x172   : > { %808 = vmatprep.subr.bf16.mxu0 %v1241_v20  ;;  %v742_v28 = vld [vmem:[%s1670_s3] ss:$0 sm:$0xff] }
 0x173   : > { %v455_v29 = vadd.f32 %v742_v28, %v446_v26  ;;  %v995_v34 = vld [vmem:[#allocation8] sm:$0xff]  }
 0x174   : > { %v743_v37 = vld [vmem:[%s1671_s18] ss:$0 sm:$0xff] }
 0x175   : > { %809 = vmatpush3.bf16.msra.mxu0 %v989_v21  ;;  %v447_v27 = vld [vmem:[#allocation2 + $0x8] sm:$0xff]  ;;  %v457_v32 = vmax.f32 %v455_v29, 0.0 }
 0x176   : > { %810 = vmatprep.subr.bf16.mxu0 %v1241_v20  ;;  %v456_v30 = vadd.f32 %v742_v28, %v447_v27 }
 0x178   : > { %v458_v33 = vmax.f32 %v456_v30, 0.0 }
 0x179   : > { %811 = vmatpush3.bf16.msra.mxu0 %v990_v22 }
 0x17a   : > { %812 = vmatprep.subr.bf16.mxu0 %v1241_v20  ;;  %v459_v35 = vpack.c.bf16 %v458_v33, %v457_v32 }
 0x17d   : > { %813 = vmatpush3.bf16.msra.mxu0 %v991_v23 }
 0x17e   : > { %814 = vmatprep.subr.bf16.mxu0 %v1241_v20 }
 0x181   : > { %815 = vmatpush3.bf16.msra.mxu0 %v992_v24 }
 0x182   : > { %816 = vmatprep.subr.bf16.mxu0 %v1241_v20 }
 0x185   : > { %817 = vmatpush3.bf16.msra.mxu0 %v993_v25 }
 0x186   : > { %818 = vmatprep.subr.bf16.mxu0 %v1241_v20 }
 0x189   : > { %819 = vmatpush3.bf16.msra.mxu0 %v994_v31 }
 0x18a   : > { %820 = vmatprep.subr.bf16.mxu0 %v1241_v20 }
 0x18d   : > { %821 = vmatpush3.bf16.msra.mxu0 %v995_v34 }
 0x190   : > { %823 = vmatmul.mubr.bf16.vlgmr.msra.gmra.mxu0 %v459_v35 }
 0x250   : > { %v565_v36 = vpop.f32.mrf.mxu0 }
 0x251   : > { %v566_v40 = vadd.f32 %v743_v37, %v565_v36 }
 0x252   : > { %v824_v38 = vpop.f32.mrf.mxu0 }
 0x254   : > { %v568_v39 = vpop.f32.mrf.mxu0 }
 0x255   : > { %v569_v41 = vadd.f32 %v743_v37, %v568_v39 }
 0x256   : > { %v825_v42 = vpop.f32.mrf.mxu0 }
 0x257   : > { %v766_v43 = vpack.c.bf16 %v569_v41, %v566_v40 }
 0x259   : > { %767 = vst [vmem:[%s312_s16] sm:$0xff] %v766_v43  }
 0x25a PF: > { %s1672_s28 = sld [smem:[#allocation17_spill]]  ;;  %s596_s13 = sshll.u32 %s312_s16, 4  ;;  %s1532_s13 = int_to_ptr.vmem [resolvable:$true] %s596_s13 }
 0x25b   : > { %s1674_s14 = sld [smem:[#allocation20_spill]]  ;;  %s1536_s2 = scalar_lea.sflag [#allocation5], %s310_s17 }
 0x25c   : > { %s1675_s15 = sld [smem:[#allocation26_spill]]  ;;  %s1078_s3 = scalar_lea.vmem %s1532_s13, 128 }
 0x25d   : > { %p1079_p5 = scmp.ne.s32.totalorder %s1532_s13, %s1078_s3  ;;  %s1243_s27 = smov [#allocation9]  }
 0x25e   : > { %s1082_s24 = sshll.u32 %s1243_s27, 4  ;;  %s1083_s24 = int_to_ptr.vmem [resolvable:$false] %s1082_s24 }
 0x25f   : > { %s1084_s18 = scalar_lea.vmem %s1083_s24, 256  ;;  %p1085_p9 = scmp.lt.s32.totalorder %s1532_s13, %s1083_s24 }
 0x260   : > { %s762_s4 = sshll.u32 %s1672_s28, 7  ;;  %p1086_p4 = scmp.lt.s32.totalorder %s1084_s18, %s1078_s3 }
 0x261   : > { %p1676_p11 = scmp.ne.s32.totalorder %s1674_s14, 0 }
 0x262   : > { %s1528_s21 = scalar_lea.hbm %s1675_s15, %s762_s4  ;;  %p1087_p12 = por %p1086_p4, %p1085_p9 }
 0x263   : > { %p1080_p0 = pnand %p1079_p5, %p1676_p11 }
 0x265   : > { %p1081_p8 = pneg %p1080_p0 }
 0x267   : > { %p1088_p6 = pnand %p1087_p12, %p1081_p8 }
 0x269   : > { %1091 = shalt.err (!%p1088_p6)
}
 0x26a   : > { %s1092_s17 = scalar_lea.hbm %s1528_s21, 128  ;;  %s1096_s28 = scalar_lea.hbm %s1675_s15, 256 }
 0x26b   : > { %p1093_p7 = scmp.ne.s32.totalorder %s1528_s21, %s1092_s17  ;;  %p1097_p10 = scmp.lt.s32.totalorder %s1528_s21, %s1675_s15 }
 0x26c   : > { %p1098_p3 = scmp.lt.s32.totalorder %s1096_s28, %s1092_s17 }
 0x26d   : > { %p1094_p13 = pnand %p1093_p7, %p1676_p11 }
 0x26e   : > { %p1099_p1 = por %p1098_p3, %p1097_p10 }
 0x26f   : > { %p1095_p2 = pneg %p1094_p13 }
 0x271   : > { %p1100_p5 = pnand %p1099_p1, %p1095_p2 }
 0x273   : > { %1103 = shalt.err (!%p1100_p5)
}
 0x274   : > { %s1244_s7 = smov 64   ;;  %s1245_s10 = smov 4  }
 0x275   : > { %835 = dma.vmem_to_hbm [thread:$0]  (%p1676_p11), %s1532_s13, 128, %s1528_s21, %s1536_s2, %s1244_s7, %s1244_s7, %s1245_s10  }
 0x276 PF: > { %s1677_s3 = sld [smem:[#allocation14_spill]]  ;;  %p855_p0 = scmp.ge.s32.totalorder %s1230_s6, 2 }
 0x277   : > { %s1678_s27 = sld [smem:[#allocation21_spill]] }
 0x27c   : > { %s611_s24 = sand.u32 1, %s1677_s3  }
 0x27d   : > { %p1679_p8 = scmp.ne.s32.totalorder %s1678_s27, 0  ;;  %s612_s18 = scalar_lea.sflag [#allocation5], %s611_s24 }
 0x27f   : > { %p849_p9 = pnand %p855_p0, %p1679_p8 }
 0x281   : > { %p850_p4 = pneg %p849_p9 }
 0x283   : > { %1173 = dma.done.wait (%p850_p4), %s612_s18, 128  }
 0x284   : > { %1175 = vsyncadd (%p850_p4), %s612_s18, 4294967168  ;;  %s24_s6 = sadd.s32 1, %s1230_s6   ;;  %s1681_s18 = sld [smem:[#allocation15_spill]] }
 0x285   : > { %p1564_p12 = scmp.ge.s32.totalorder %s24_s6, 8   ;;  %s1682_s14 = sld [smem:[#allocation22_spill]] }
 0x286   : > { %s1683_s19 = smov %s1186_s20  ;;  %s1684_s20 = smov %s1422_s5 }
 0x287   : > { %s1685_s21 = smov %s1194_s22  ;;  %s1686_s22 = smov %s1198_s23 }
 0x288   : > { %s1687_s23 = smov %s1452_s8  ;;  %s1688_s24 = smov %s1206_s25 }
 0x289   : > { %s1689_s25 = smov %s1210_s26  ;;  %s1690_s26 = smov %s1425_s12 }
 0x28a   : > { %s1691_s27 = smov %s1222_s29  ;;  %s1692_s28 = smov %s1226_s30 }
 0x28b   : > { %s1693_s29 = smov %s1682_s14  ;;  %s1694_s30 = smov %s1700_s9 }
 0x28c   :  { %23 = sbr.rel (!%p1564_p12) target bundleno = 17 (0x11), region = 110 }
 0x291   :  { %617 = vsyncpa [#allocation4], 1 }
 0x292   :  { %619 = vsyncpa [#allocation4 + $0x1], 1 }
 0x293   :  { %620 = vsyncpa [#allocation7], 1 }
 0x294   :  { %622 = vsyncpa [#allocation7 + $0x1], 1 }
 0x295   :  { %623 = vsyncpa [#allocation5], 1 }
 0x296   :  { %625 = vsyncpa [#allocation5 + $0x1], 1 }

</bundles_post_ra>
